<compile_context>
chip_gen: v7x
topology: tpu7x:2x2x1
jax: 0.10.0
libtpu: 0.0.40
codegen_flags: <defaults>
</compile_context>

<pallas_src>
import functools
import math

import jax
import jax.numpy as jnp
from jax.experimental import pallas as pl
from jax.experimental.pallas import tpu as pltpu


_LANE = 128        # lane width / feature padding quantum
_SUBLANE = 8       # sublane quantum for the node (row) dimension
_ATT_COLS = 128    # lane-padded width of the packed attention-logit columns

# bf16 MXU operands on TPU; plain f32 otherwise (e.g. interpret mode on a CPU host,
# whose XLA dot thunk does not support BF16 x BF16 = F32).
_COMPUTE_DTYPE = jnp.bfloat16 if jax.default_backend() == "tpu" else jnp.float32


def _round_up(v, m):
    return (v + m - 1) // m * m


@functools.lru_cache(maxsize=1)
def _vmem_limit_bytes():
    # ~75% of physical VMEM: ~96 MiB on v5e/v6e (128 MiB), ~48 MiB on v7x (64 MiB).
    try:
        cap = int(getattr(pltpu.get_tpu_info(), "vmem_capacity_bytes"))
        return min(cap * 3 // 4, 112 * 1024 * 1024)
    except Exception:
        return 48 * 1024 * 1024


# ----------------------------------------------------------------------------
# Prologue kernel: shared linear projection + packed attention-logit terms.
# One grid step = one tile of TM node rows.  W_ext = [W | W @ A] so a single
# MXU matmul yields both xp and all heads' src/dst logit terms.
# ----------------------------------------------------------------------------
def _project_kernel(x_ref, wext_ref, xp_ref, logit_ref, *, fout_pad):
    y = jnp.dot(x_ref[...], wext_ref[...], preferred_element_type=jnp.float32)
    xp_ref[...] = y[:, :fout_pad].astype(xp_ref.dtype)     # [TM, Fout_pad]
    logit_ref[...] = y[:, fout_pad:]                        # [TM, 128] f32


# ----------------------------------------------------------------------------
# Attention kernel: one GATConv (+ optional LayerNorm + LeakyReLU) per dst tile.
#   adj_ref  : [TM, NP] int8   adjacency rows of this dst tile (adj[dst, src])
#   xp_ref   : [NP, Fout_pad]  projected source features (resident)
#   dstl_ref : [TM, 128] f32   dst-side logit terms (cols heads..2*heads-1 used)
#   srct_ref : [Hpad, NP] f32  src-side logit terms, transposed (resident)
# ----------------------------------------------------------------------------
def _gat_attn_kernel(adj_ref, xp_ref, dstl_ref, srct_ref, bias_ref, gamma_ref,
                     beta_ref, o_ref, *, heads, head_dim, fout, negative_slope,
                     apply_norm_act, ln_eps):
    tile_m, fout_pad = o_ref.shape
    np_all = xp_ref.shape[0]
    i = pl.program_id(0)

    adj = adj_ref[...]
    # Self-loops folded into the mask (GATConv add_self_loops=True); padded rows also
    # get a self-loop so every softmax row has a finite entry.
    row0 = i * tile_m
    rows = jax.lax.broadcasted_iota(jnp.int32, (tile_m, np_all), 0) + row0
    cols = jax.lax.broadcasted_iota(jnp.int32, (tile_m, np_all), 1)
    edge_mask = (adj > 0) | (rows == cols)

    xp = xp_ref[...]                                         # [NP, Fout_pad]
    dstl = dstl_ref[...]                                     # [TM, 128] f32
    lane = jax.lax.broadcasted_iota(jnp.int32, (1, fout_pad), 1)

    acc = jnp.zeros((tile_m, fout_pad), jnp.float32)
    for h in range(heads):
        # e[dst, src] = a_dst_h[dst] + a_src_h[src]
        e = dstl[:, heads + h:heads + h + 1] + srct_ref[h:h + 1, :]   # [TM, NP] f32
        e = jnp.where(e > 0, e, negative_slope * e)                   # LeakyReLU(0.2)
        e = jnp.where(edge_mask, e, -1e30)                            # mask non-edges
        m = jnp.max(e, axis=1, keepdims=True)
        p = jnp.exp(e - m)                                            # unnormalized
        s = jnp.sum(p, axis=1, keepdims=True)                         # [TM, 1]
        # Full-lane-width aggregation (fills the MXU result path) with DEFERRED
        # softmax normalization: scale the [TM, Fout_pad] result, not [TM, NP].
        agg = jnp.dot(p.astype(xp.dtype), xp, preferred_element_type=jnp.float32)
        inv = pl.reciprocal(s, approx=True)
        in_head = (lane >= h * head_dim) & (lane < (h + 1) * head_dim)
        acc = acc + jnp.where(in_head, agg * inv, 0.0)                # lane-select

    out = acc + bias_ref[...]                                         # pad cols stay 0

    if apply_norm_act:
        # LayerNorm over the *logical* feature width only (pad cols of `out` are 0).
        inv_f = 1.0 / float(fout)
        cmask = (lane < fout).astype(jnp.float32)
        mu = jnp.sum(out, axis=-1, keepdims=True) * inv_f
        d = (out - mu) * cmask
        var = jnp.sum(d * d, axis=-1, keepdims=True) * inv_f
        out = d * jax.lax.rsqrt(var + ln_eps)
        out = out * gamma_ref[...] + beta_ref[...]                    # pad cols -> 0
        out = jnp.where(out > 0, out, negative_slope * out)           # LeakyReLU(0.2)

    o_ref[...] = out.astype(o_ref.dtype)


# ----------------------------------------------------------------------------
# Wrapper: pads to TPU-friendly shapes, hoists the projection, launches the
# attention kernel tiled over destination-node rows.
# ----------------------------------------------------------------------------
def gat_block(x, adj_i8, p, *, heads, apply_norm_act, tile_m=256):
    """One GATConv(+LayerNorm+LeakyReLU) layer (two Pallas calls).

    x      : [N, Fin_pad]  node features (lane-padded; pad cols must be zero)
    adj_i8 : [N, N] int8   dense adjacency mask, adj[dst, src] != 0 means edge
    Returns [N, Fout_pad] in the compute dtype (lane-padded; pad cols are zero).
    """
    n, fin = x.shape
    fin_pad = p["W_ext"].shape[0]
    fout_pad = p["W_ext"].shape[1] - _ATT_COLS
    fout = p["fout"]
    head_dim = fout // heads
    assert fin <= fin_pad, (fin, fin_pad)

    # --- node-row padding / dst-row tiling ------------------------------------
    np_ = _round_up(n, _LANE)                 # lane-aligned padded node count
    tm = min(tile_m, np_)
    if tm == np_ and np_ >= 2 * _SUBLANE:     # keep >= 2 tiles so both v7x TCs work
        tm = np_ // 2
    tm = max(_SUBLANE, _round_up(tm, _SUBLANE))
    while np_ % tm:                           # tm must tile the padded node count
        tm -= _SUBLANE
    grid = (np_ // tm,)

    cdt = _COMPUTE_DTYPE
    x_p = jnp.zeros((np_, fin_pad), cdt).at[:n, :fin].set(x.astype(cdt))
    adj_p = jnp.zeros((np_, np_), jnp.int8).at[:n, :n].set(adj_i8)

    vmem = _vmem_limit_bytes()

    # --- prologue: hoisted projection + packed attention logits ---------------
    xp, logits = pl.pallas_call(
        functools.partial(_project_kernel, fout_pad=fout_pad),
        out_shape=(jax.ShapeDtypeStruct((np_, fout_pad), cdt),
                   jax.ShapeDtypeStruct((np_, _ATT_COLS), jnp.float32)),
        grid_spec=pltpu.PrefetchScalarGridSpec(
            num_scalar_prefetch=0, grid=grid,
            in_specs=[
                pl.BlockSpec((tm, fin_pad), lambda i: (i, 0)),
                pl.BlockSpec((fin_pad, fout_pad + _ATT_COLS), lambda i: (0, 0)),
            ],
            out_specs=[
                pl.BlockSpec((tm, fout_pad), lambda i: (i, 0)),
                pl.BlockSpec((tm, _ATT_COLS), lambda i: (i, 0)),
            ]),
        compiler_params=pltpu.CompilerParams(
            dimension_semantics=("parallel",), vmem_limit_bytes=vmem),
    )(x_p, p["W_ext"].astype(cdt))

    # Src-side logit terms transposed ONCE per layer (not per dst tile).
    hpad = _round_up(heads, _SUBLANE)
    src_t = jnp.zeros((hpad, np_), jnp.float32).at[:heads, :].set(logits[:, :heads].T)

    kernel = functools.partial(
        _gat_attn_kernel, heads=heads, head_dim=head_dim, fout=fout,
        negative_slope=0.2, apply_norm_act=apply_norm_act, ln_eps=1e-5)

    cost = pl.CostEstimate(
        flops=int(2 * heads * np_ * np_ * fout_pad          # aggregation matmuls
                  + 10 * heads * np_ * np_),                # softmax elementwise
        transcendentals=int(heads * np_ * np_),
        bytes_accessed=int(np_ * np_                        # int8 adjacency
                           + 4 * np_ * fout_pad + 4 * np_ * _ATT_COLS
                           + 4 * hpad * np_))

    out = pl.pallas_call(
        kernel,
        out_shape=jax.ShapeDtypeStruct((np_, fout_pad), cdt),
        grid_spec=pltpu.PrefetchScalarGridSpec(
            num_scalar_prefetch=0, grid=grid,
            in_specs=[
                pl.BlockSpec((tm, np_), lambda i: (i, 0)),        # adj dst tile (int8)
                pl.BlockSpec((np_, fout_pad), lambda i: (0, 0)),  # xp (resident)
                pl.BlockSpec((tm, _ATT_COLS), lambda i: (i, 0)),  # dst logit tile
                pl.BlockSpec((hpad, np_), lambda i: (0, 0)),      # src logits^T (res.)
                pl.BlockSpec((1, fout_pad), lambda i: (0, 0)),    # bias
                pl.BlockSpec((1, fout_pad), lambda i: (0, 0)),    # gamma
                pl.BlockSpec((1, fout_pad), lambda i: (0, 0)),    # beta
            ],
            out_specs=pl.BlockSpec((tm, fout_pad), lambda i: (i, 0))),
        compiler_params=pltpu.CompilerParams(
            dimension_semantics=("parallel",), vmem_limit_bytes=vmem),
        cost_estimate=cost,
    )(adj_p, xp, logits, src_t, p["bias"], p["gamma"], p["beta"])

    # Slice padded node rows off (pooling top_k must never see padded rows);
    # feature columns stay lane-padded end-to-end by design.
    return out[:n]


# ----------------------------------------------------------------------------
# Parameter initialization (deterministic; shapes follow the PyTorch module,
# lane-padded to multiples of 128 with zero pad rows/cols).
# ----------------------------------------------------------------------------
def init_generator(key, in_channels, hidden_channels, pool_ratios, heads):
    hidden = [_round_up(h, heads) for h in hidden_channels]
    assert len(pool_ratios) == len(hidden) - 1
    assert 2 * heads <= _ATT_COLS
    keys = iter(jax.random.split(key, 256))

    def gat_params(in_widths, out_c):
        assert out_c % heads == 0
        fin_pads = [_round_up(w, _LANE) for w in in_widths]
        fout_pad = _round_up(out_c, _LANE)
        lim = math.sqrt(6.0 / (sum(in_widths) + out_c))
        # Weight rows are placed block-wise so they line up with lane-padded
        # (possibly concatenated) inputs; pad rows/cols are zero.
        W = jnp.zeros((sum(fin_pads), fout_pad), jnp.float32)
        roff = 0
        for w_log, w_pad in zip(in_widths, fin_pads):
            blk = jax.random.uniform(next(keys), (w_log, out_c), jnp.float32, -lim, lim)
            W = W.at[roff:roff + w_log, :out_c].set(blk)
            roff += w_pad
        att_src = jax.random.normal(next(keys), (out_c,), jnp.float32) * 0.1
        att_dst = jax.random.normal(next(keys), (out_c,), jnp.float32) * 0.1
        c = out_c // heads
        # Packed attention matrix: col h -> att_src of head h, col heads+h -> att_dst.
        A = jnp.zeros((fout_pad, _ATT_COLS), jnp.float32)
        for h in range(heads):
            A = A.at[h * c:(h + 1) * c, h].set(att_src[h * c:(h + 1) * c])
            A = A.at[h * c:(h + 1) * c, heads + h].set(att_dst[h * c:(h + 1) * c])
        # Fused RHS: one MXU pass produces projection AND logit terms (x @ [W | W@A]).
        W_ext = jnp.concatenate([W, W @ A], axis=1)
        return dict(
            W_ext=W_ext,
            bias=jnp.zeros((1, fout_pad), jnp.float32),
            gamma=jnp.zeros((1, fout_pad), jnp.float32).at[0, :out_c].set(1.0),
            beta=jnp.zeros((1, fout_pad), jnp.float32),
            fout=out_c)

    encoders, enc_inputs = [], []
    curr = in_channels
    for h_dim, ratio in zip(hidden[:-1], pool_ratios):
        enc_inputs.append(curr)
        fout_pad = _round_up(h_dim, _LANE)
        encoders.append(dict(
            gat=gat_params([curr], h_dim),
            pool_w=jnp.zeros((fout_pad,), jnp.float32).at[:h_dim].set(
                jax.random.normal(next(keys), (h_dim,), jnp.float32)),
            ratio=ratio))
        curr = h_dim

    bottleneck = gat_params([hidden[-2]], hidden[-1])

    reversed_hidden = list(reversed(hidden))
    skip_dims = list(reversed(enc_inputs))          # literal decode() data flow (TODO above)
    decoders = [gat_params([reversed_hidden[i], skip_dims[i]], reversed_hidden[i + 1])
                for i in range(len(hidden) - 1)]

    final_out = _round_up(in_channels, heads)
    output = gat_params([hidden[0]], final_out)

    return dict(encoders=encoders, bottleneck=bottleneck, decoders=decoders,
                output=output, hidden=hidden)


# ----------------------------------------------------------------------------
# Generator forward (Pallas kernels for GAT blocks; pooling/scatter glue in JAX)
# ----------------------------------------------------------------------------
def generator_forward(params, x, adj, *, in_channels, heads, tile_m=256):
    n = x.shape[0]
    # Features flow lane-padded (multiples of 128) end-to-end; pad the input once.
    fin_pad = _round_up(in_channels, _LANE)
    x = jnp.zeros((n, fin_pad), jnp.float32).at[:, :in_channels].set(x)
    adj = (adj != 0).astype(jnp.int8)              # 0/1 adjacency, adj[dst, src]

    encoded = []
    cur_x, cur_adj = x, adj

    # --- encode ---
    for enc in params["encoders"]:
        h = gat_block(cur_x, cur_adj, enc["gat"], heads=heads,
                      apply_norm_act=True, tile_m=tile_m)
        # TopKPooling (score + top-k node selection): data-dependent glue in XLA.
        w = enc["pool_w"]
        score = jnp.tanh((h.astype(jnp.float32) @ w) / jnp.linalg.norm(w))
        k = int(math.ceil(enc["ratio"] * h.shape[0]))
        _, perm = jax.lax.top_k(score, k)
        encoded.append((cur_x, cur_adj, perm))
        cur_x = h[perm].astype(jnp.float32) * score[perm][:, None]
        cur_adj = cur_adj[perm][:, perm]

    cur_x = gat_block(cur_x, cur_adj, params["bottleneck"], heads=heads,
                      apply_norm_act=True, tile_m=tile_m)

    # --- decode ---
    for dec, (skip_x, skip_adj, perm) in zip(params["decoders"], reversed(encoded)):
        x_up = jnp.zeros((skip_x.shape[0], cur_x.shape[1]),
                         jnp.float32).at[perm].set(cur_x.astype(jnp.float32))
        xin = jnp.concatenate([x_up, skip_x.astype(jnp.float32)], axis=-1)
        cur_x = gat_block(xin, skip_adj, dec, heads=heads,
                          apply_norm_act=True, tile_m=tile_m)

    # --- output GATConv (no norm / activation) ---
    out = gat_block(cur_x, adj, params["output"], heads=heads,
                    apply_norm_act=False, tile_m=tile_m)
    return out[:, :in_channels].astype(jnp.float32)


# ----------------------------------------------------------------------------
if __name__ == "__main__":
    key = jax.random.PRNGKey(0)
    N, E = 128, 512
    in_channels = 8
    hidden_channels = [16, 32, 64]
    pool_ratios = [0.8, 0.6]
    heads = 4

    kx, ks, kd, kp = jax.random.split(key, 4)
    x = jax.random.normal(kx, (N, in_channels), jnp.float32)
    src = jax.random.randint(ks, (E,), 0, N)
    dst = jax.random.randint(kd, (E,), 0, N)
    # dense adjacency mask adj[dst, src] = 1.0 (edge_index equivalent)
    adj = jnp.zeros((N, N), jnp.float32).at[dst, src].set(1.0)

    params = init_generator(kp, in_channels, hidden_channels, pool_ratios, heads)
    out = generator_forward(params, x, adj, in_channels=in_channels, heads=heads)
    out = jax.block_until_ready(out)
    assert out.shape == (N, in_channels), out.shape
    assert bool(jnp.all(jnp.isfinite(out)))
    print("KERNEL_OK")
</pallas_src>

<mosaic_0001>
module attributes {stable_mosaic.version = 11 : i64} {
  func.func @_project_kernel(%arg0: i32, %arg1: memref<64x128xf32, #tpu.memory_space<vmem>>, %arg2: memref<128x256xf32, #tpu.memory_space<vmem>>, %arg3: memref<64x128xf32, #tpu.memory_space<vmem>>, %arg4: memref<64x128xf32, #tpu.memory_space<vmem>>) attributes {dimension_semantics = [#tpu.dimension_semantics<parallel>], iteration_bounds = array<i64: 2>, scalar_prefetch = 0 : i64, scratch_operands = 0 : i64, tpu.core_type = #tpu.core_type<tc>, window_params = [{transform_indices = @transform_0, window_bounds = array<i64: 64, 128>}, {pipeline_mode = #tpu.pipeline_mode<synchronous>, transform_indices = @transform_1, window_bounds = array<i64: 128, 256>}, {transform_indices = @transform_2, window_bounds = array<i64: 64, 128>}, {transform_indices = @transform_3, window_bounds = array<i64: 64, 128>}]} {
    %c0 = arith.constant 0 : index
    %c0_0 = arith.constant 0 : index
    %0 = vector.load %arg1[%c0, %c0_0] : memref<64x128xf32, #tpu.memory_space<vmem>>, vector<64x128xf32>
    %c0_1 = arith.constant 0 : index
    %c0_2 = arith.constant 0 : index
    %1 = vector.load %arg2[%c0_1, %c0_2] : memref<128x256xf32, #tpu.memory_space<vmem>>, vector<128x256xf32>
    %cst = arith.constant dense<0.000000e+00> : vector<64x256xf32>
    %2 = tpu.matmul %0, %1, %cst {dimension_numbers = #tpu.dot_dimension_numbers<[1], [0], [0], [1], [0, 0, 1, 1], [], []>} : vector<64x128xf32>, vector<128x256xf32>, vector<64x256xf32> -> vector<64x256xf32>
    %3 = vector.extract_strided_slice %2 {offsets = [0, 0], sizes = [64, 128], strides = [1, 1]} : vector<64x256xf32> to vector<64x128xf32>
    %c0_3 = arith.constant 0 : index
    %c0_4 = arith.constant 0 : index
    %4 = vector.load %arg3[%c0_3, %c0_4] : memref<64x128xf32, #tpu.memory_space<vmem>>, vector<64x128xf32>
    tpu.vector_store %arg3[%c0_3, %c0_4], %3 {strides = array<i32>} : memref<64x128xf32, #tpu.memory_space<vmem>>, vector<64x128xf32>,
    %5 = vector.extract_strided_slice %2 {offsets = [0, 128], sizes = [64, 128], strides = [1, 1]} : vector<64x256xf32> to vector<64x128xf32>
    %c0_5 = arith.constant 0 : index
    %c0_6 = arith.constant 0 : index
    %6 = vector.load %arg4[%c0_5, %c0_6] : memref<64x128xf32, #tpu.memory_space<vmem>>, vector<64x128xf32>
    tpu.vector_store %arg4[%c0_5, %c0_6], %5 {strides = array<i32>} : memref<64x128xf32, #tpu.memory_space<vmem>>, vector<64x128xf32>,
    return
  }
  func.func @transform_0(%arg0: i32) -> (i32, i32) {
    %c0_i32 = arith.constant 0 : i32
    %c0_i32_0 = arith.constant 0 : i32
    return %arg0, %c0_i32 : i32, i32
  }
  func.func @transform_1(%arg0: i32) -> (i32, i32) {
    %c0_i32 = arith.constant 0 : i32
    %c0_i32_0 = arith.constant 0 : i32
    %c0_i32_1 = arith.constant 0 : i32
    return %c0_i32, %c0_i32_0 : i32, i32
  }
  func.func @transform_2(%arg0: i32) -> (i32, i32) {
    %c0_i32 = arith.constant 0 : i32
    %c0_i32_0 = arith.constant 0 : i32
    return %arg0, %c0_i32 : i32, i32
  }
  func.func @transform_3(%arg0: i32) -> (i32, i32) {
    %c0_i32 = arith.constant 0 : i32
    %c0_i32_0 = arith.constant 0 : i32
    return %arg0, %c0_i32 : i32, i32
  }
}

</mosaic_0001>

<bundles_post_ra>
// kernel: tpu_custom_call.1
= control target key start
LH: loop header
LB: loop body
LE: loop exit
PB: predicated region body
PF: predicated region fallthrough
CT: control target
= control target key end

     0   :  { %9 = vsyncpa [#allocation3], 0  ;;  %s1153_s0 = inlined_call_operand.hbm [shape: f32[128,128], index: 0, kind: input, shape index: {}]   ;;  %s1154_s1 = inlined_call_operand.hbm [shape: f32[128,256], index: 1, kind: input, shape index: {}]   ;;  %s1155_s2 = inlined_call_operand.hbm [shape: f32[128,128], index: 2, kind: output, shape index: {0}]   ;;  %s1156_s3 = inlined_call_operand.hbm [shape: f32[128,128], index: 3, kind: output, shape index: {1}]  }
   0x1   :  { %11 = vsyncpa [#allocation3 + $0x1], 0 }
   0x2   :  { %12 = vsyncpa [#allocation6], 0 }
   0x3   :  { %13 = vsyncpa [#allocation4], 0 }
   0x4   :  { %15 = vsyncpa [#allocation4 + $0x1], 0 }
   0x5   :  { %16 = vsyncpa [#allocation9], 0 }
   0x6   :  { %18 = vsyncpa [#allocation9 + $0x1], 0  ;;  %s870_s12 = smov 0   ;;  %s872_s13 = smov 0  }
   0x7   :  { %s874_s14 = smov 0   ;;  %s876_s15 = smov 0  }
   0x8 LB: > { %s891_s16 = sadd.s32 4294967295, %s837_s15   ;;  %s537_s17 = sadd.s32 4294967294, %s837_s15   ;;  %s837_s15 = sphi %s876_s15, %s1176_s15   ;;  %s833_s14 = sphi %s874_s14, %s1175_s14   ;;  %s829_s13 = sphi %s872_s13, %s1174_s13   ;;  %s825_s12 = sphi %s870_s12, %s1173_s12  }
   0x9   : > { %p44_p0 = scmp.ne.s32.totalorder %s829_s13, %s825_s12  ;;  %p1157_p1 = scmp.eq.s32.totalorder %s891_s16, 0 }
   0xa   : > { %p95_p3 = scmp.eq.s32.totalorder %s537_s17, 1  ;;  %p538_p5 = scmp.ge.s32.totalorder %s837_s15, 1 }
   0xb   : > { %p900_p4 = por %p1157_p1, %p44_p0  ;;  %p128_p7 = scmp.lt.s32.totalorder %s837_s15, 3 }
   0xc   : > { %p905_p6 = por %p95_p3, %p44_p0  ;;  %s839_s21 = smov [#allocation5]  }
   0xd   : > { %s1160_s18 = scalar_select %p900_p4, 1, 0 }
   0xe   : > { %s1161_s19 = scalar_select %p905_p6, 1, 0 }
   0xf   : > { %p910_p8 = pnand %p538_p5, %p128_p7  ;;  %s140_s22 = sshll.u32 %s839_s21, 4  ;;  %s914_s22 = int_to_ptr.vmem [resolvable:$true] %s140_s22 }
  0x10   : > { %s926_s24 = sadd.s32 1, %s837_s15   ;;  %s31_s25 = sadd.s32 1, %s833_s14 }
  0x11   : > { %s1162_s20 = scalar_select %p910_p8, 1, 0 }
  0x12   : > { %p618_p9 = pneg %p910_p8  ;;  %s28_s26 = ssub.s32 %s837_s15, %s926_s24 }
  0x13   : > { %s677_s29 = scalar_lea.hbm %s1154_s1, 4096 }
  0x14   : > { %p921_p11 = pnand %p618_p9, %p1157_p1  ;;  %p678_p12 = scmp.ne.s32.totalorder %s1154_s1, %s677_s29 }
  0x15   : > { %p684_p5 = scmp.lt.u32.totalorder %s677_s29, %s1154_s1 }
  0x16   : > { %p679_p13 = pneg %p921_p11 }
  0x18   : > { %p680_p0 = pnand %p679_p13, %p678_p12 }
  0x1a   : > { %p681_p3 = pneg %p680_p0 }
  0x1c   : > { %p686_p7 = pnand %p684_p5, %p681_p3 }
  0x1e   : > { %689 = shalt.err (!%p686_p7)
}
  0x1f   : > { %s690_s7 = scalar_lea.vmem %s914_s22, 4096  ;;  %p698_p2 = scmp.lt.s32.totalorder %s914_s22, %s914_s22 }
  0x20   : > { %p691_p9 = scmp.ne.s32.totalorder %s914_s22, %s690_s7  ;;  %p699_p6 = scmp.lt.s32.totalorder %s690_s7, %s690_s7 }
  0x22   : > { %p693_p10 = pnand %p691_p9, %p679_p13  ;;  %p700_p4 = por %p699_p6, %p698_p2 }
  0x24   : > { %p694_p1 = pneg %p693_p10 }
  0x26   : > { %p701_p8 = pnand %p700_p4, %p694_p1 }
  0x28   : > { %704 = shalt.err (!%p701_p8)
}
  0x29   : > { %s840_s8 = smov 256   ;;  %s841_s9 = smov 16  }
  0x2a   : > { %621 = dma.hbm_to_vmem [thread:$0]  (!%p921_p11), %s1154_s1, 4096, %s914_s22, [#allocation6], %s840_s8, %s840_s8, %s841_s9  }
  0x2b   : > { %p29_p2 = scmp.eq.s32.totalorder %s28_s26, 0  ;;  %p38_p1 = scmp.ne.s32.totalorder %s833_s14, %s829_s13 }
  0x2c   : > { %p39_p4 = scmp.eq.s32.totalorder %s837_s15, 0  ;;  %p634_p6 = scmp.lt.s32.totalorder %s837_s15, 2 }
  0x2d   : > { %s957_s17 = scalar_select %p29_p2, %s833_s14, %s31_s25  }
  0x2e   : > { %p40_p8 = por %p39_p4, %p38_p1  ;;  %p1164_p10 = scmp.eq.s32.totalorder %s891_s16, 1 }
  0x2f   : > { %s154_s27 = sand.u32 1, %s833_s14   ;;  %s557_s28 = sshll.u32 %s837_s15, 10 }
  0x30   : > { %p961_p12 = por %p1164_p10, %p38_p1  ;;  %s541_s29 = sshll.u32 %s154_s27, 6 }
  0x31   : > { %s970_s4 = scalar_lea.hbm %s1153_s0, %s557_s28  ;;  %s158_s22 = scalar_lea.vmem [#allocation2], %s541_s29 }
  0x32   : > { %s165_s25 = sshll.u32 %s158_s22, 4  ;;  %p972_p11 = pnand %p634_p6, %p40_p8  ;;  %s976_s25 = int_to_ptr.vmem [resolvable:$true] %s165_s25 }
  0x33   : > { %s978_s5 = scalar_lea.sflag [#allocation3], %s154_s27  ;;  %s705_s6 = scalar_lea.hbm %s970_s4, 1024 }
  0x34   : > { %p706_p13 = scmp.ne.s32.totalorder %s970_s4, %s705_s6  ;;  %p707_p0 = pneg %p972_p11 }
  0x35   : > { %s710_s9 = scalar_lea.hbm %s1153_s0, 2048  ;;  %p711_p7 = scmp.lt.u32.totalorder %s970_s4, %s1153_s0 }
  0x36   : > { %p708_p3 = pnand %p707_p0, %p706_p13  ;;  %p712_p9 = scmp.lt.u32.totalorder %s710_s9, %s705_s6 }
  0x37   : > { %p714_p1 = scmp.lt.u32.totalorder %s705_s6, %s970_s4 }
  0x38   : > { %p709_p5 = pneg %p708_p3  ;;  %p713_p2 = por %p712_p9, %p711_p7 }
  0x3a   : > { %p715_p4 = por %p714_p1, %p713_p2 }
  0x3c   : > { %p716_p6 = pnand %p715_p4, %p709_p5 }
  0x3e   : > { %719 = shalt.err (!%p716_p6)
}
  0x3f   : > { %s720_s27 = scalar_lea.vmem %s976_s25, 1024  ;;  %s842_s28 = smov [#allocation2]  }
  0x40   : > { %p721_p8 = scmp.ne.s32.totalorder %s976_s25, %s720_s27  ;;  %s725_s29 = sshll.u32 %s842_s28, 4  ;;  %s726_s29 = int_to_ptr.vmem [resolvable:$false] %s725_s29 }
  0x41   : > { %s727_s23 = scalar_lea.vmem %s726_s29, 2048  ;;  %p728_p3 = scmp.lt.s32.totalorder %s976_s25, %s726_s29 }
  0x42   : > { %p723_p10 = pnand %p721_p8, %p707_p0  ;;  %p729_p7 = scmp.lt.s32.totalorder %s727_s23, %s720_s27 }
  0x44   : > { %p724_p13 = pneg %p723_p10  ;;  %p730_p9 = por %p729_p7, %p728_p3 }
  0x46   : > { %p731_p2 = pnand %p730_p9, %p724_p13 }
  0x48   : > { %734 = shalt.err (!%p731_p2)
}
  0x49   : > { %s843_s30 = smov 128   ;;  %s844_s22 = smov 8  }
  0x4a   : > { %625 = dma.hbm_to_vmem [thread:$0]  (!%p972_p11), %s970_s4, 1024, %s976_s25, %s978_s5, %s843_s30, %s843_s30, %s844_s22  }
  0x4b   : > { %p1167_p0 = scmp.ne.s32.totalorder %s1162_s20, 0 }
  0x4c   : > { %s1009_s6 = sand.u32 (!%p1167_p0), 1, %s829_s13   ;;  %p1168_p5 = scmp.ne.s32.totalorder (!%p1167_p0), %s1160_s18, 0 }
  0x4d   : > { %177 = sbr.rel (%p1167_p0) target bundleno = 386 (0x182), region = 28  ;;  %s1012_s7 = sshll.u32 (!%p1167_p0), %s1009_s6, 6 }
  0x4e   : > { %s180_s8 = scalar_lea.sflag (!%p1167_p0), [#allocation3], %s1009_s6  ;;  %s1016_s9 = scalar_lea.vmem (!%p1167_p0), [#allocation2], %s1012_s7 }
  0x54   : > { %808 = dma.done.wait (%p1168_p5), %s180_s8, 1024  }
  0x55   : > { %810 = vsyncadd (%p1168_p5), %s180_s8, 4294966272  ;;  %p1169_p11 = scmp.eq.s32.totalorder %s891_s16, 0 }
  0x57   : > { %812 = dma.done.wait (%p1169_p11), [#allocation6], 4096   ;;  %p1170_p1 = pmov %p1169_p11 }
  0x58   : > { %v845_v0 = vmov 0.0   ;;  %v227_v1 = vld [vmem:[#allocation5 + $0x8] sm:$0xff]  ;;  %v229_v2 = vld [vmem:[#allocation5 + $0x18] sm:$0xff]  ;;  %v226_v3 = vld [vmem:[#allocation5] sm:$0xff]  ;;  %s1043_s18 = scalar_lea.vmem [#allocation7], %s1012_s7  ;;  %s1048_s20 = scalar_lea.vmem [#allocation8], %s1012_s7 }
  0x59   : > { %814 = vsyncadd (%p1170_p1), [#allocation6], 4294963200  ;;  %322 = vmatprep.mubr.f32.mxu0 %v845_v0  ;;  %346 = vmatprep.mubr.f32.mxu1 %v845_v0  ;;  %v560_v4 = vpack.c.bf16 %v229_v2, %v227_v1  ;;  %v228_v5 = vld [vmem:[#allocation5 + $0x10] sm:$0xff]  ;;  %v231_v6 = vld [vmem:[#allocation5 + $0x28] sm:$0xff]  ;;  %s406_s4 = sshll.u32 %s1043_s18, 4  ;;  %s422_s25 = sshll.u32 %s1048_s20, 4  ;;  %s1059_s4 = int_to_ptr.vmem [resolvable:$true] %s406_s4  ;;  %s1061_s25 = int_to_ptr.vmem [resolvable:$true] %s422_s25 }
  0x5a   : > { %v233_v7 = vld [vmem:[#allocation5 + $0x38] sm:$0xff]  ;;  %v562_v8 = vpack.c.bf16 %v228_v5, %v226_v3  ;;  %v230_v10 = vld [vmem:[#allocation5 + $0x20] sm:$0xff]  ;;  %v232_v11 = vld [vmem:[#allocation5 + $0x30] sm:$0xff]  ;;  %s558_s26 = sshll.u32 %s891_s16, 10  ;;  %s388_s29 = scalar_lea.sflag [#allocation4], %s1009_s6 }
  0x5b   : > { %v564_v9 = vpack.c.bf16 %v233_v7, %v231_v6  ;;  %v235_v12 = vld [vmem:[#allocation5 + $0x48] sm:$0xff]  ;;  %561 = vmatprep.subr.bf16.mxu0 %v560_v4  ;;  %592 = vmatprep.subr.bf16.mxu1 %v560_v4  ;;  %v237_v13 = vld [vmem:[#allocation5 + $0x58] sm:$0xff]  ;;  %v566_v14 = vpack.c.bf16 %v232_v11, %v230_v10  ;;  %v234_v16 = vld [vmem:[#allocation5 + $0x40] sm:$0xff]  ;;  %s1070_s10 = scalar_lea.hbm %s1155_s2, %s558_s26  ;;  %s1075_s28 = scalar_lea.hbm %s1156_s3, %s558_s26 }
  0x5c   : > { %563 = vmatpush1.bf16.msra.mxu0 %v562_v8  ;;  %600 = vmatpush1.bf16.msra.mxu1 %v562_v8  ;;  %v568_v15 = vpack.c.bf16 %v237_v13, %v235_v12  ;;  %v236_v17 = vld [vmem:[#allocation5 + $0x50] sm:$0xff]  ;;  %v239_v18 = vld [vmem:[#allocation5 + $0x68] sm:$0xff]  ;;  %v241_v19 = vld [vmem:[#allocation5 + $0x78] sm:$0xff]  ;;  %s735_s23 = scalar_lea.vmem %s1059_s4, 1024  ;;  %s846_s30 = smov [#allocation7]  }
  0x5d   : > { %565 = vmatprep.subr.bf16.mxu0 %v564_v9  ;;  %593 = vmatprep.subr.bf16.mxu1 %v564_v9  ;;  %v570_v20 = vpack.c.bf16 %v236_v17, %v234_v16  ;;  %v572_v21 = vpack.c.bf16 %v241_v19, %v239_v18  ;;  %v238_v22 = vld [vmem:[#allocation5 + $0x60] sm:$0xff]  ;;  %v240_v23 = vld [vmem:[#allocation5 + $0x70] sm:$0xff]  ;;  %v243_v24 = vld [vmem:[#allocation5 + $0x88] sm:$0xff]  ;;  %p736_p4 = scmp.ne.s32.totalorder %s1059_s4, %s735_s23  ;;  %s739_s22 = sshll.u32 %s846_s30, 4  ;;  %s740_s22 = int_to_ptr.vmem [resolvable:$false] %s739_s22 }
  0x5e   : > { %v245_v25 = vld [vmem:[#allocation5 + $0x98] sm:$0xff]  ;;  %v574_v26 = vpack.c.bf16 %v240_v23, %v238_v22  ;;  %v242_v28 = vld [vmem:[#allocation5 + $0x80] sm:$0xff]  ;;  %v244_v29 = vld [vmem:[#allocation5 + $0x90] sm:$0xff]  ;;  %s741_s7 = scalar_lea.vmem %s740_s22, 2048  ;;  %p742_p10 = scmp.lt.s32.totalorder %s1059_s4, %s740_s22 }
  0x5f   : > { %v576_v27 = vpack.c.bf16 %v245_v25, %v243_v24  ;;  %v247_v30 = vld [vmem:[#allocation5 + $0xa8] sm:$0xff]  ;;  %v249_v31 = vld [vmem:[#allocation5 + $0xb8] sm:$0xff]  ;;  %v578_v32 = vpack.c.bf16 %v244_v29, %v242_v28  ;;  %v246_v34 = vld [vmem:[#allocation5 + $0xa0] sm:$0xff]  ;;  %p737_p6 = pnand %p736_p4, %p961_p12  ;;  %p743_p13 = scmp.lt.s32.totalorder %s741_s7, %s735_s23 }
  0x60   : > { %567 = vmatpush1.bf16.msra.mxu0 %v566_v14  ;;  %601 = vmatpush1.bf16.msra.mxu1 %v566_v14  ;;  %v580_v33 = vpack.c.bf16 %v249_v31, %v247_v30  ;;  %v248_v35 = vld [vmem:[#allocation5 + $0xb0] sm:$0xff]  ;;  %v251_v36 = vld [vmem:[#allocation5 + $0xc8] sm:$0xff]  ;;  %v253_v37 = vld [vmem:[#allocation5 + $0xd8] sm:$0xff] }
  0x61   : > { %569 = vmatprep.subr.bf16.mxu0 %v568_v15  ;;  %594 = vmatprep.subr.bf16.mxu1 %v568_v15  ;;  %v582_v38 = vpack.c.bf16 %v248_v35, %v246_v34  ;;  %v584_v39 = vpack.c.bf16 %v253_v37, %v251_v36  ;;  %v250_v40 = vld [vmem:[#allocation5 + $0xc0] sm:$0xff]  ;;  %v252_v41 = vld [vmem:[#allocation5 + $0xd0] sm:$0xff]  ;;  %v255_v42 = vld [vmem:[#allocation5 + $0xe8] sm:$0xff]  ;;  %p738_p8 = pneg %p737_p6  ;;  %p744_p3 = por %p743_p13, %p742_p10 }
  0x62   : > { %v257_v43 = vld [vmem:[#allocation5 + $0xf8] sm:$0xff]  ;;  %v586_v44 = vpack.c.bf16 %v252_v41, %v250_v40  ;;  %v254_v46 = vld [vmem:[#allocation5 + $0xe0] sm:$0xff]  ;;  %v256_v47 = vld [vmem:[#allocation5 + $0xf0] sm:$0xff] }
  0x63   : > { %v588_v45 = vpack.c.bf16 %v257_v43, %v255_v42  ;;  %v590_v48 = vpack.c.bf16 %v256_v47, %v254_v46  ;;  %v218_v49 = vld [vmem:[%s1016_s9] sm:$0xff]  ;;  %v219_v51 = vld [vmem:[%s1016_s9 + $0x8] sm:$0xff]  ;;  %v220_v53 = vld [vmem:[%s1016_s9 + $0x10] sm:$0xff]  ;;  %p745_p7 = pnand %p744_p3, %p738_p8 }
  0x64   : > { %571 = vmatpush1.bf16.msra.mxu0 %v570_v20  ;;  %602 = vmatpush1.bf16.msra.mxu1 %v570_v20  ;;  %v222_v50 = vld [vmem:[%s1016_s9 + $0x20] sm:$0xff]  ;;  %v223_v52 = vld [vmem:[%s1016_s9 + $0x28] sm:$0xff]  ;;  %v224_v54 = vld [vmem:[%s1016_s9 + $0x30] sm:$0xff] }
  0x65   : > { %573 = vmatprep.subr.bf16.mxu0 %v572_v21  ;;  %595 = vmatprep.subr.bf16.mxu1 %v572_v21  ;;  %v221_v55 = vld [vmem:[%s1016_s9 + $0x18] sm:$0xff] }
  0x66   : > { %v225_v56 = vld [vmem:[%s1016_s9 + $0x38] sm:$0xff] }
  0x68   : > { %575 = vmatpush1.bf16.msra.mxu0 %v574_v26  ;;  %603 = vmatpush1.bf16.msra.mxu1 %v574_v26 }
  0x69   : > { %577 = vmatprep.subr.bf16.mxu0 %v576_v27  ;;  %596 = vmatprep.subr.bf16.mxu1 %v576_v27 }
  0x6c   : > { %579 = vmatpush1.bf16.msra.mxu0 %v578_v32  ;;  %604 = vmatpush1.bf16.msra.mxu1 %v578_v32 }
  0x6d   : > { %581 = vmatprep.subr.bf16.mxu0 %v580_v33  ;;  %597 = vmatprep.subr.bf16.mxu1 %v580_v33 }
  0x70   : > { %583 = vmatpush1.bf16.msra.mxu0 %v582_v38  ;;  %605 = vmatpush1.bf16.msra.mxu1 %v582_v38 }
  0x71   : > { %585 = vmatprep.subr.bf16.mxu0 %v584_v39  ;;  %598 = vmatprep.subr.bf16.mxu1 %v584_v39 }
  0x74   : > { %587 = vmatpush1.bf16.msra.mxu0 %v586_v44  ;;  %606 = vmatpush1.bf16.msra.mxu1 %v586_v44 }
  0x75   : > { %589 = vmatprep.subr.bf16.mxu0 %v588_v45  ;;  %599 = vmatprep.subr.bf16.mxu1 %v588_v45 }
  0x78   : > { %591 = vmatpush1.bf16.msra.mxu0 %v590_v48  ;;  %607 = vmatpush1.bf16.msra.mxu1 %v590_v48 }
  0x7b   : > { %323 = vmatmul.mubr.f32.vlgmr.msra.gmra.mrb[0].mxu0 %v218_v49  ;;  %347 = vmatmul.mubr.f32.vlgmr.msra.gmra.mrb[0].mxu1 %v222_v50 }
  0x7c   : > { %328 = vmatprep.mubr.f32.mxu0 %v845_v0  ;;  %352 = vmatprep.mubr.f32.mxu1 %v845_v0 }
  0x7f   : > { %329 = vmatmul.mubr.f32.gmra.mrb[2].mxu0 %v219_v51  ;;  %353 = vmatmul.mubr.f32.gmra.mrb[2].mxu1 %v223_v52 }
  0x80   : > { %334 = vmatprep.mubr.f32.mxu0 %v845_v0  ;;  %358 = vmatprep.mubr.f32.mxu1 %v845_v0 }
  0x83   : > { %335 = vmatmul.mubr.f32.gmra.mrb[4].mxu0 %v220_v53  ;;  %359 = vmatmul.mubr.f32.gmra.mrb[4].mxu1 %v224_v54 }
  0x84   : > { %340 = vmatprep.mubr.f32.mxu0 %v845_v0  ;;  %364 = vmatprep.mubr.f32.mxu1 %v845_v0 }
  0x87   : > { %341 = vmatmul.mubr.f32.gmra.mrb[6].mxu0 %v221_v55  ;;  %365 = vmatmul.mubr.f32.gmra.mrb[6].mxu1 %v225_v56 }
 0x14e   : > { %v324_v57 = vpop.f32.mrb[0].mxu0  ;;  %v348_v58 = vpop.f32.mrb[0].mxu1 }
 0x14f   : > { %371 = vst [vmem:[%s1043_s18] sm:$0xff] %v324_v57  ;;  %375 = vst [vmem:[%s1043_s18 + $0x20] sm:$0xff] %v348_v58  ;;  %v326_v59 = vpop.f32.mrb[1].mxu0  ;;  %v350_v60 = vpop.f32.mrb[1].mxu1 }
 0x150   : > { %379 = vst [vmem:[%s1048_s20] sm:$0xff] %v326_v59  ;;  %383 = vst [vmem:[%s1048_s20 + $0x20] sm:$0xff] %v350_v60 }
 0x152   : > { %v330_v61 = vpop.f32.mrb[2].mxu0  ;;  %v354_v62 = vpop.f32.mrb[2].mxu1 }
 0x153   : > { %372 = vst [vmem:[%s1043_s18 + $0x8] sm:$0xff] %v330_v61  ;;  %376 = vst [vmem:[%s1043_s18 + $0x28] sm:$0xff] %v354_v62  ;;  %v332_v63 = vpop.f32.mrb[3].mxu0  ;;  %v356_v0 = vpop.f32.mrb[3].mxu1 }
 0x154   : > { %380 = vst [vmem:[%s1048_s20 + $0x8] sm:$0xff] %v332_v63  ;;  %384 = vst [vmem:[%s1048_s20 + $0x28] sm:$0xff] %v356_v0 }
 0x156   : > { %v336_v1 = vpop.f32.mrb[4].mxu0  ;;  %v360_v2 = vpop.f32.mrb[4].mxu1 }
 0x157   : > { %373 = vst [vmem:[%s1043_s18 + $0x10] sm:$0xff] %v336_v1  ;;  %377 = vst [vmem:[%s1043_s18 + $0x30] sm:$0xff] %v360_v2  ;;  %v338_v3 = vpop.f32.mrb[5].mxu0  ;;  %v362_v4 = vpop.f32.mrb[5].mxu1 }
 0x158   : > { %381 = vst [vmem:[%s1048_s20 + $0x10] sm:$0xff] %v338_v3  ;;  %385 = vst [vmem:[%s1048_s20 + $0x30] sm:$0xff] %v362_v4 }
 0x15a   : > { %v342_v5 = vpop.f32.mrb[6].mxu0  ;;  %v366_v6 = vpop.f32.mrb[6].mxu1 }
 0x15b   : > { %374 = vst [vmem:[%s1043_s18 + $0x18] sm:$0xff] %v342_v5  ;;  %378 = vst [vmem:[%s1043_s18 + $0x38] sm:$0xff] %v366_v6  ;;  %v344_v7 = vpop.f32.mrb[7].mxu0  ;;  %v368_v8 = vpop.f32.mrb[7].mxu1 }
 0x15c   : > { %382 = vst [vmem:[%s1048_s20 + $0x18] sm:$0xff] %v344_v7  ;;  %386 = vst [vmem:[%s1048_s20 + $0x38] sm:$0xff] %v368_v8 }
 0x15d   : > { %748 = shalt.err (!%p745_p7)
}
 0x15e   : > { %s749_s8 = scalar_lea.hbm %s1070_s10, 1024  ;;  %s753_s20 = scalar_lea.hbm %s1155_s2, 2048 }
 0x15f   : > { %p750_p9 = scmp.ne.s32.totalorder %s1070_s10, %s749_s8  ;;  %p754_p5 = scmp.lt.u32.totalorder %s1070_s10, %s1155_s2 }
 0x160   : > { %p755_p11 = scmp.lt.u32.totalorder %s753_s20, %s749_s8  ;;  %p757_p4 = scmp.lt.u32.totalorder %s749_s8, %s1070_s10 }
 0x161   : > { %p751_p2 = pnand %p750_p9, %p961_p12 }
 0x162   : > { %p756_p1 = por %p755_p11, %p754_p5 }
 0x163   : > { %p752_p0 = pneg %p751_p2 }
 0x164   : > { %p758_p6 = por %p757_p4, %p756_p1 }
 0x166   : > { %p759_p8 = pnand %p758_p6, %p752_p0 }
 0x168   : > { %762 = shalt.err (!%p759_p8)
}
 0x169   : > { %s847_s5 = smov 128   ;;  %s848_s11 = smov 8  }
 0x16a   : > { %614 = dma.vmem_to_hbm [thread:$0]  (%p961_p12), %s1059_s4, 1024, %s1070_s10, %s388_s29, %s847_s5, %s847_s5, %s848_s11  }
 0x16b   : > { %s393_s27 = scalar_lea.sflag [#allocation9], %s1009_s6  ;;  %s763_s23 = scalar_lea.vmem %s1061_s25, 1024 }
 0x16c   : > { %p764_p10 = scmp.ne.s32.totalorder %s1061_s25, %s763_s23  ;;  %s849_s30 = smov [#allocation8]  }
 0x16d   : > { %s767_s22 = sshll.u32 %s849_s30, 4  ;;  %s768_s22 = int_to_ptr.vmem [resolvable:$false] %s767_s22 }
 0x16e   : > { %p765_p13 = pnand %p764_p10, %p961_p12  ;;  %s769_s7 = scalar_lea.vmem %s768_s22, 2048 }
 0x16f   : > { %p770_p7 = scmp.lt.s32.totalorder %s1061_s25, %s768_s22  ;;  %p771_p9 = scmp.lt.s32.totalorder %s769_s7, %s763_s23 }
 0x170   : > { %p766_p3 = pneg %p765_p13 }
 0x171   : > { %p772_p2 = por %p771_p9, %p770_p7 }
 0x173   : > { %p773_p0 = pnand %p772_p2, %p766_p3 }
 0x175   : > { %776 = shalt.err (!%p773_p0)
}
 0x176   : > { %s777_s4 = scalar_lea.hbm %s1075_s28, 1024  ;;  %s781_s8 = scalar_lea.hbm %s1156_s3, 2048 }
 0x177   : > { %p778_p5 = scmp.ne.s32.totalorder %s1075_s28, %s777_s4  ;;  %p782_p4 = scmp.lt.u32.totalorder %s1075_s28, %s1156_s3 }
 0x178   : > { %p783_p6 = scmp.lt.u32.totalorder %s781_s8, %s777_s4  ;;  %p785_p10 = scmp.lt.u32.totalorder %s777_s4, %s1075_s28 }
 0x179   : > { %p779_p11 = pnand %p778_p5, %p961_p12 }
 0x17a   : > { %p784_p8 = por %p783_p6, %p782_p4 }
 0x17b   : > { %p780_p1 = pneg %p779_p11 }
 0x17c   : > { %p786_p13 = por %p785_p10, %p784_p8 }
 0x17e   : > { %p787_p3 = pnand %p786_p13, %p780_p1 }
 0x180   : > { %790 = shalt.err (!%p787_p3)
}
 0x181   : > { %615 = dma.vmem_to_hbm [thread:$0]  (%p961_p12), %s1061_s25, 1024, %s1075_s28, %s393_s27, %s847_s5, %s847_s5, %s848_s11  }
 0x182 PF: > { %s437_s20 = sand.u32 1, %s825_s12   ;;  %p1171_p7 = scmp.ne.s32.totalorder %s1161_s19, 0 }
 0x183   : > { %p1172_p9 = scmp.ge.s32.totalorder %s837_s15, 2  ;;  %s438_s26 = scalar_lea.sflag [#allocation4], %s437_s20 }
 0x185   : > { %p627_p2 = pnand %p1172_p9, %p1171_p7 }
 0x187   : > { %816 = dma.done.wait (!%p627_p2), %s438_s26, 1024  }
 0x188   : > { %818 = vsyncadd (!%p627_p2), %s438_s26, 4294966272  ;;  %s447_s21 = scalar_lea.sflag [#allocation9], %s437_s20 }
 0x189   : > { %820 = dma.done.wait (!%p627_p2), %s447_s21, 1024  }
 0x18a   : > { %822 = vsyncadd (!%p627_p2), %s447_s21, 4294966272  ;;  %p21_p12 = scmp.ge.s32.totalorder %s926_s24, 4   ;;  %s1173_s12 = smov %s829_s13 }
 0x18b   : > { %s1174_s13 = smov %s833_s14  ;;  %s1175_s14 = smov %s957_s17 }
 0x18c   : > { %s1176_s15 = smov %s926_s24  ;;  %23 = sbr.rel (!%p21_p12) target bundleno = 8 (0x8), region = 94 }
 0x193   :  { %452 = vsyncpa [#allocation3], 1 }
 0x194   :  { %454 = vsyncpa [#allocation3 + $0x1], 1 }
 0x195   :  { %455 = vsyncpa [#allocation6], 1 }
 0x196   :  { %456 = vsyncpa [#allocation4], 1 }
 0x197   :  { %458 = vsyncpa [#allocation4 + $0x1], 1 }
 0x198   :  { %459 = vsyncpa [#allocation9], 1 }
 0x199   :  { %461 = vsyncpa [#allocation9 + $0x1], 1 }

</bundles_post_ra>
